<compile_context>
chip_gen: v7x
topology: tpu7x:2x2x1
jax: 0.10.0
libtpu: 0.0.40
codegen_flags: <defaults>
</compile_context>

<pallas_src>
import functools
import math

import jax
import jax.numpy as jnp
import numpy as np
from jax import lax
from jax.experimental import pallas as pl
from jax.experimental.pallas import tpu as pltpu


# ---------------------------------------------------------------------------
# Fused kernel: multi-layer tanh RNN recurrence + last-step FC head.
#   refs = (x, [wih_l, whh_l, b_l] * num_layers, wfc, bfc, o)
#   x:   (B, T, D)   batch-first, like nn.RNN(batch_first=True)
#   wih: (D_in, H)   (PyTorch weight_ih_l{k}, stored transposed)
#   whh: (H, H)      (PyTorch weight_hh_l{k}, stored transposed)
#   b:   (1, H)      (= bias_ih + bias_hh)
#   wfc: (H, O), bfc: (1, O)
# ---------------------------------------------------------------------------
def rnn_fc_kernel(*refs, num_layers):
    x_ref = refs[0]
    wfc_ref = refs[1 + 3 * num_layers]
    bfc_ref = refs[2 + 3 * num_layers]
    o_ref = refs[-1]

    x = x_ref[...]                                   # (B, T, D)
    B, T, _ = x.shape

    # In-kernel batch-first -> time-major flatten: row block t holds all
    # batch rows of timestep t.  Done once; feeds the hoisted projections.
    cur = jnp.concatenate([x[:, t, :] for t in range(T)], axis=0)   # (T*B, D)

    h = None
    for l in range(num_layers):
        wih = refs[1 + 3 * l][...]                   # (D_in, H)
        whh = refs[2 + 3 * l][...]                   # (H, H)
        b = refs[3 + 3 * l][...]                     # (1, H)

        # Hoisted input projection for ALL timesteps: one MXU push per layer,
        # both biases folded in.
        gx = jnp.dot(cur, wih, preferred_element_type=jnp.float32) + b   # (T*B, H)

        # Fully unrolled recurrence, h carried in vregs (no scratch traffic).
        # t = 0: h_prev is zero, so h @ whh is skipped entirely.
        h = jnp.tanh(gx[0:B, :])
        outs = [h]
        for t in range(1, T):
            h = jnp.tanh(gx[t * B:(t + 1) * B, :]
                         + jnp.dot(h, whh, preferred_element_type=jnp.float32))
            outs.append(h)

        if l + 1 < num_layers:
            # Time-major hidden sequence feeds the next layer's hoisted matmul.
            cur = jnp.concatenate(outs, axis=0)      # (T*B, H)

    # out[:, -1, :] -> fc   (h is the last layer's last-timestep hidden state)
    o_ref[...] = (jnp.dot(h, wfc_ref[...], preferred_element_type=jnp.float32)
                  + bfc_ref[...])


def rnn_forward(x, layer_params, fc_params):
    B, T, _ = x.shape
    wfc, bfc = fc_params
    O = wfc.shape[1]
    L = len(layer_params)

    flat = []
    for wih, whh, b in layer_params:
        flat += [wih, whh, b]
    args = [x] + flat + [wfc, bfc]

    vmem_spec = lambda: pl.BlockSpec(memory_space=pltpu.MemorySpace.VMEM)
    return pl.pallas_call(
        functools.partial(rnn_fc_kernel, num_layers=L),
        out_shape=jax.ShapeDtypeStruct((B, O), jnp.float32),
        in_specs=[vmem_spec() for _ in args],
        out_specs=vmem_spec(),
    )(*args)


# ---------------------------------------------------------------------------
# Parameter construction (deterministic, PyTorch-style uniform init)
# ---------------------------------------------------------------------------
def _uniform(key, shape, bound):
    return jax.random.uniform(key, shape, jnp.float32, -bound, bound)


def make_params(key, D, H, L, O):
    keys = jax.random.split(key, 4 * L + 2)
    bound = 1.0 / math.sqrt(H)
    layer_params = []
    for l in range(L):
        d_in = D if l == 0 else H
        k0, k1, k2, k3 = keys[4 * l:4 * l + 4]
        wih = _uniform(k0, (d_in, H), bound)                 # W_ih^T
        whh = _uniform(k1, (H, H), bound)                    # W_hh^T
        b = _uniform(k2, (1, H), bound) + _uniform(k3, (1, H), bound)  # b_ih+b_hh
        layer_params.append((wih, whh, b))
    wfc = _uniform(keys[4 * L], (H, O), bound)               # Linear weight^T
    bfc = _uniform(keys[4 * L + 1], (1, O), bound)
    return layer_params, (wfc, bfc)


# ---------------------------------------------------------------------------
# Pure-JAX reference (mirrors the PyTorch forward exactly)
# ---------------------------------------------------------------------------
def reference_forward(x, layer_params, fc_params):
    B = x.shape[0]
    cur = x
    for wih, whh, b in layer_params:
        H = whh.shape[0]

        def step(h, x_t, wih=wih, whh=whh, b=b):
            h = jnp.tanh(x_t @ wih + h @ whh + b)
            return h, h

        h0 = jnp.zeros((B, H), jnp.float32)
        _, hs = lax.scan(step, h0, jnp.transpose(cur, (1, 0, 2)))   # (T, B, H)
        cur = jnp.transpose(hs, (1, 0, 2))                          # (B, T, H)
    wfc, bfc = fc_params
    return cur[:, -1, :] @ wfc + bfc


if __name__ == "__main__":
    B, T = 2, 8
    D = 32       # input_size
    H = 32       # hidden_size
    L = 2        # num_layers
    O = 8        # output_size

    root = jax.random.PRNGKey(0)
    k_x, k_p = jax.random.split(root)
    x = jax.random.normal(k_x, (B, T, D), jnp.float32)
    layer_params, fc_params = make_params(k_p, D, H, L, O)

    out = jax.block_until_ready(rnn_forward(x, layer_params, fc_params))
    ref = jax.block_until_ready(reference_forward(x, layer_params, fc_params))

    np.testing.assert_allclose(np.asarray(out), np.asarray(ref),
                               rtol=1e-3, atol=1e-3)
    print("KERNEL_OK")
</pallas_src>

<mosaic_0001>
module attributes {stable_mosaic.version = 11 : i64} {
  func.func @rnn_fc_kernel(%arg0: memref<2x8x32xf32, #tpu.memory_space<vmem>>, %arg1: memref<32x32xf32, #tpu.memory_space<vmem>>, %arg2: memref<32x32xf32, #tpu.memory_space<vmem>>, %arg3: memref<1x32xf32, #tpu.memory_space<vmem>>, %arg4: memref<32x32xf32, #tpu.memory_space<vmem>>, %arg5: memref<32x32xf32, #tpu.memory_space<vmem>>, %arg6: memref<1x32xf32, #tpu.memory_space<vmem>>, %arg7: memref<32x8xf32, #tpu.memory_space<vmem>>, %arg8: memref<1x8xf32, #tpu.memory_space<vmem>>, %arg9: memref<2x8xf32, #tpu.memory_space<vmem>>) attributes {dimension_semantics = [], scalar_prefetch = 0 : i64, scratch_operands = 0 : i64, tpu.core_type = #tpu.core_type<tc>} {
    %c0 = arith.constant 0 : index
    %c0_0 = arith.constant 0 : index
    %c0_1 = arith.constant 0 : index
    %0 = vector.load %arg0[%c0, %c0_0, %c0_1] : memref<2x8x32xf32, #tpu.memory_space<vmem>>, vector<2x8x32xf32>
    %1 = vector.extract_strided_slice %0 {offsets = [0, 0, 0], sizes = [2, 1, 32], strides = [1, 1, 1]} : vector<2x8x32xf32> to vector<2x1x32xf32>
    %2 = vector.shape_cast %1 : vector<2x1x32xf32> to vector<2x32xf32>
    %3 = vector.extract_strided_slice %0 {offsets = [0, 1, 0], sizes = [2, 1, 32], strides = [1, 1, 1]} : vector<2x8x32xf32> to vector<2x1x32xf32>
    %4 = vector.shape_cast %3 : vector<2x1x32xf32> to vector<2x32xf32>
    %5 = vector.extract_strided_slice %0 {offsets = [0, 2, 0], sizes = [2, 1, 32], strides = [1, 1, 1]} : vector<2x8x32xf32> to vector<2x1x32xf32>
    %6 = vector.shape_cast %5 : vector<2x1x32xf32> to vector<2x32xf32>
    %7 = vector.extract_strided_slice %0 {offsets = [0, 3, 0], sizes = [2, 1, 32], strides = [1, 1, 1]} : vector<2x8x32xf32> to vector<2x1x32xf32>
    %8 = vector.shape_cast %7 : vector<2x1x32xf32> to vector<2x32xf32>
    %9 = vector.extract_strided_slice %0 {offsets = [0, 4, 0], sizes = [2, 1, 32], strides = [1, 1, 1]} : vector<2x8x32xf32> to vector<2x1x32xf32>
    %10 = vector.shape_cast %9 : vector<2x1x32xf32> to vector<2x32xf32>
    %11 = vector.extract_strided_slice %0 {offsets = [0, 5, 0], sizes = [2, 1, 32], strides = [1, 1, 1]} : vector<2x8x32xf32> to vector<2x1x32xf32>
    %12 = vector.shape_cast %11 : vector<2x1x32xf32> to vector<2x32xf32>
    %13 = vector.extract_strided_slice %0 {offsets = [0, 6, 0], sizes = [2, 1, 32], strides = [1, 1, 1]} : vector<2x8x32xf32> to vector<2x1x32xf32>
    %14 = vector.shape_cast %13 : vector<2x1x32xf32> to vector<2x32xf32>
    %15 = vector.extract_strided_slice %0 {offsets = [0, 7, 0], sizes = [2, 1, 32], strides = [1, 1, 1]} : vector<2x8x32xf32> to vector<2x1x32xf32>
    %16 = vector.shape_cast %15 : vector<2x1x32xf32> to vector<2x32xf32>
    %17 = tpu.concatenate %2, %4, %6, %8, %10, %12, %14, %16 in 0 : vector<2x32xf32>, vector<2x32xf32>, vector<2x32xf32>, vector<2x32xf32>, vector<2x32xf32>, vector<2x32xf32>, vector<2x32xf32>, vector<2x32xf32> -> vector<16x32xf32>
    %c0_2 = arith.constant 0 : index
    %c0_3 = arith.constant 0 : index
    %18 = vector.load %arg1[%c0_2, %c0_3] : memref<32x32xf32, #tpu.memory_space<vmem>>, vector<32x32xf32>
    %c0_4 = arith.constant 0 : index
    %c0_5 = arith.constant 0 : index
    %19 = vector.load %arg2[%c0_4, %c0_5] : memref<32x32xf32, #tpu.memory_space<vmem>>, vector<32x32xf32>
    %c0_6 = arith.constant 0 : index
    %c0_7 = arith.constant 0 : index
    %20 = vector.load %arg3[%c0_6, %c0_7] : memref<1x32xf32, #tpu.memory_space<vmem>>, vector<1x32xf32>
    %cst = arith.constant dense<0.000000e+00> : vector<16x32xf32>
    %21 = tpu.matmul %17, %18, %cst {dimension_numbers = #tpu.dot_dimension_numbers<[1], [0], [0], [1], [0, 0, 1, 1], [], []>} : vector<16x32xf32>, vector<32x32xf32>, vector<16x32xf32> -> vector<16x32xf32>
    %22 = vector.broadcast %20 : vector<1x32xf32> to vector<16x32xf32>
    %23 = arith.addf %21, %22 : vector<16x32xf32>
    %24 = vector.extract_strided_slice %23 {offsets = [0, 0], sizes = [2, 32], strides = [1, 1]} : vector<16x32xf32> to vector<2x32xf32>
    %25 = math.tanh %24 : vector<2x32xf32>
    %26 = vector.extract_strided_slice %23 {offsets = [2, 0], sizes = [2, 32], strides = [1, 1]} : vector<16x32xf32> to vector<2x32xf32>
    %cst_8 = arith.constant dense<0.000000e+00> : vector<2x32xf32>
    %27 = tpu.matmul %25, %19, %cst_8 {dimension_numbers = #tpu.dot_dimension_numbers<[1], [0], [0], [1], [0, 0, 1, 1], [], []>} : vector<2x32xf32>, vector<32x32xf32>, vector<2x32xf32> -> vector<2x32xf32>
    %28 = arith.addf %26, %27 : vector<2x32xf32>
    %29 = math.tanh %28 : vector<2x32xf32>
    %30 = vector.extract_strided_slice %23 {offsets = [4, 0], sizes = [2, 32], strides = [1, 1]} : vector<16x32xf32> to vector<2x32xf32>
    %cst_9 = arith.constant dense<0.000000e+00> : vector<2x32xf32>
    %31 = tpu.matmul %29, %19, %cst_9 {dimension_numbers = #tpu.dot_dimension_numbers<[1], [0], [0], [1], [0, 0, 1, 1], [], []>} : vector<2x32xf32>, vector<32x32xf32>, vector<2x32xf32> -> vector<2x32xf32>
    %32 = arith.addf %30, %31 : vector<2x32xf32>
    %33 = math.tanh %32 : vector<2x32xf32>
    %34 = vector.extract_strided_slice %23 {offsets = [6, 0], sizes = [2, 32], strides = [1, 1]} : vector<16x32xf32> to vector<2x32xf32>
    %cst_10 = arith.constant dense<0.000000e+00> : vector<2x32xf32>
    %35 = tpu.matmul %33, %19, %cst_10 {dimension_numbers = #tpu.dot_dimension_numbers<[1], [0], [0], [1], [0, 0, 1, 1], [], []>} : vector<2x32xf32>, vector<32x32xf32>, vector<2x32xf32> -> vector<2x32xf32>
    %36 = arith.addf %34, %35 : vector<2x32xf32>
    %37 = math.tanh %36 : vector<2x32xf32>
    %38 = vector.extract_strided_slice %23 {offsets = [8, 0], sizes = [2, 32], strides = [1, 1]} : vector<16x32xf32> to vector<2x32xf32>
    %cst_11 = arith.constant dense<0.000000e+00> : vector<2x32xf32>
    %39 = tpu.matmul %37, %19, %cst_11 {dimension_numbers = #tpu.dot_dimension_numbers<[1], [0], [0], [1], [0, 0, 1, 1], [], []>} : vector<2x32xf32>, vector<32x32xf32>, vector<2x32xf32> -> vector<2x32xf32>
    %40 = arith.addf %38, %39 : vector<2x32xf32>
    %41 = math.tanh %40 : vector<2x32xf32>
    %42 = vector.extract_strided_slice %23 {offsets = [10, 0], sizes = [2, 32], strides = [1, 1]} : vector<16x32xf32> to vector<2x32xf32>
    %cst_12 = arith.constant dense<0.000000e+00> : vector<2x32xf32>
    %43 = tpu.matmul %41, %19, %cst_12 {dimension_numbers = #tpu.dot_dimension_numbers<[1], [0], [0], [1], [0, 0, 1, 1], [], []>} : vector<2x32xf32>, vector<32x32xf32>, vector<2x32xf32> -> vector<2x32xf32>
    %44 = arith.addf %42, %43 : vector<2x32xf32>
    %45 = math.tanh %44 : vector<2x32xf32>
    %46 = vector.extract_strided_slice %23 {offsets = [12, 0], sizes = [2, 32], strides = [1, 1]} : vector<16x32xf32> to vector<2x32xf32>
    %cst_13 = arith.constant dense<0.000000e+00> : vector<2x32xf32>
    %47 = tpu.matmul %45, %19, %cst_13 {dimension_numbers = #tpu.dot_dimension_numbers<[1], [0], [0], [1], [0, 0, 1, 1], [], []>} : vector<2x32xf32>, vector<32x32xf32>, vector<2x32xf32> -> vector<2x32xf32>
    %48 = arith.addf %46, %47 : vector<2x32xf32>
    %49 = math.tanh %48 : vector<2x32xf32>
    %50 = vector.extract_strided_slice %23 {offsets = [14, 0], sizes = [2, 32], strides = [1, 1]} : vector<16x32xf32> to vector<2x32xf32>
    %cst_14 = arith.constant dense<0.000000e+00> : vector<2x32xf32>
    %51 = tpu.matmul %49, %19, %cst_14 {dimension_numbers = #tpu.dot_dimension_numbers<[1], [0], [0], [1], [0, 0, 1, 1], [], []>} : vector<2x32xf32>, vector<32x32xf32>, vector<2x32xf32> -> vector<2x32xf32>
    %52 = arith.addf %50, %51 : vector<2x32xf32>
    %53 = math.tanh %52 : vector<2x32xf32>
    %54 = tpu.concatenate %25, %29, %33, %37, %41, %45, %49, %53 in 0 : vector<2x32xf32>, vector<2x32xf32>, vector<2x32xf32>, vector<2x32xf32>, vector<2x32xf32>, vector<2x32xf32>, vector<2x32xf32>, vector<2x32xf32> -> vector<16x32xf32>
    %c0_15 = arith.constant 0 : index
    %c0_16 = arith.constant 0 : index
    %55 = vector.load %arg4[%c0_15, %c0_16] : memref<32x32xf32, #tpu.memory_space<vmem>>, vector<32x32xf32>
    %c0_17 = arith.constant 0 : index
    %c0_18 = arith.constant 0 : index
    %56 = vector.load %arg5[%c0_17, %c0_18] : memref<32x32xf32, #tpu.memory_space<vmem>>, vector<32x32xf32>
    %c0_19 = arith.constant 0 : index
    %c0_20 = arith.constant 0 : index
    %57 = vector.load %arg6[%c0_19, %c0_20] : memref<1x32xf32, #tpu.memory_space<vmem>>, vector<1x32xf32>
    %cst_21 = arith.constant dense<0.000000e+00> : vector<16x32xf32>
    %58 = tpu.matmul %54, %55, %cst_21 {dimension_numbers = #tpu.dot_dimension_numbers<[1], [0], [0], [1], [0, 0, 1, 1], [], []>} : vector<16x32xf32>, vector<32x32xf32>, vector<16x32xf32> -> vector<16x32xf32>
    %59 = vector.broadcast %57 : vector<1x32xf32> to vector<16x32xf32>
    %60 = arith.addf %58, %59 : vector<16x32xf32>
    %61 = vector.extract_strided_slice %60 {offsets = [0, 0], sizes = [2, 32], strides = [1, 1]} : vector<16x32xf32> to vector<2x32xf32>
    %62 = math.tanh %61 : vector<2x32xf32>
    %63 = vector.extract_strided_slice %60 {offsets = [2, 0], sizes = [2, 32], strides = [1, 1]} : vector<16x32xf32> to vector<2x32xf32>
    %cst_22 = arith.constant dense<0.000000e+00> : vector<2x32xf32>
    %64 = tpu.matmul %62, %56, %cst_22 {dimension_numbers = #tpu.dot_dimension_numbers<[1], [0], [0], [1], [0, 0, 1, 1], [], []>} : vector<2x32xf32>, vector<32x32xf32>, vector<2x32xf32> -> vector<2x32xf32>
    %65 = arith.addf %63, %64 : vector<2x32xf32>
    %66 = math.tanh %65 : vector<2x32xf32>
    %67 = vector.extract_strided_slice %60 {offsets = [4, 0], sizes = [2, 32], strides = [1, 1]} : vector<16x32xf32> to vector<2x32xf32>
    %cst_23 = arith.constant dense<0.000000e+00> : vector<2x32xf32>
    %68 = tpu.matmul %66, %56, %cst_23 {dimension_numbers = #tpu.dot_dimension_numbers<[1], [0], [0], [1], [0, 0, 1, 1], [], []>} : vector<2x32xf32>, vector<32x32xf32>, vector<2x32xf32> -> vector<2x32xf32>
    %69 = arith.addf %67, %68 : vector<2x32xf32>
    %70 = math.tanh %69 : vector<2x32xf32>
    %71 = vector.extract_strided_slice %60 {offsets = [6, 0], sizes = [2, 32], strides = [1, 1]} : vector<16x32xf32> to vector<2x32xf32>
    %cst_24 = arith.constant dense<0.000000e+00> : vector<2x32xf32>
    %72 = tpu.matmul %70, %56, %cst_24 {dimension_numbers = #tpu.dot_dimension_numbers<[1], [0], [0], [1], [0, 0, 1, 1], [], []>} : vector<2x32xf32>, vector<32x32xf32>, vector<2x32xf32> -> vector<2x32xf32>
    %73 = arith.addf %71, %72 : vector<2x32xf32>
    %74 = math.tanh %73 : vector<2x32xf32>
    %75 = vector.extract_strided_slice %60 {offsets = [8, 0], sizes = [2, 32], strides = [1, 1]} : vector<16x32xf32> to vector<2x32xf32>
    %cst_25 = arith.constant dense<0.000000e+00> : vector<2x32xf32>
    %76 = tpu.matmul %74, %56, %cst_25 {dimension_numbers = #tpu.dot_dimension_numbers<[1], [0], [0], [1], [0, 0, 1, 1], [], []>} : vector<2x32xf32>, vector<32x32xf32>, vector<2x32xf32> -> vector<2x32xf32>
    %77 = arith.addf %75, %76 : vector<2x32xf32>
    %78 = math.tanh %77 : vector<2x32xf32>
    %79 = vector.extract_strided_slice %60 {offsets = [10, 0], sizes = [2, 32], strides = [1, 1]} : vector<16x32xf32> to vector<2x32xf32>
    %cst_26 = arith.constant dense<0.000000e+00> : vector<2x32xf32>
    %80 = tpu.matmul %78, %56, %cst_26 {dimension_numbers = #tpu.dot_dimension_numbers<[1], [0], [0], [1], [0, 0, 1, 1], [], []>} : vector<2x32xf32>, vector<32x32xf32>, vector<2x32xf32> -> vector<2x32xf32>
    %81 = arith.addf %79, %80 : vector<2x32xf32>
    %82 = math.tanh %81 : vector<2x32xf32>
    %83 = vector.extract_strided_slice %60 {offsets = [12, 0], sizes = [2, 32], strides = [1, 1]} : vector<16x32xf32> to vector<2x32xf32>
    %cst_27 = arith.constant dense<0.000000e+00> : vector<2x32xf32>
    %84 = tpu.matmul %82, %56, %cst_27 {dimension_numbers = #tpu.dot_dimension_numbers<[1], [0], [0], [1], [0, 0, 1, 1], [], []>} : vector<2x32xf32>, vector<32x32xf32>, vector<2x32xf32> -> vector<2x32xf32>
    %85 = arith.addf %83, %84 : vector<2x32xf32>
    %86 = math.tanh %85 : vector<2x32xf32>
    %87 = vector.extract_strided_slice %60 {offsets = [14, 0], sizes = [2, 32], strides = [1, 1]} : vector<16x32xf32> to vector<2x32xf32>
    %cst_28 = arith.constant dense<0.000000e+00> : vector<2x32xf32>
    %88 = tpu.matmul %86, %56, %cst_28 {dimension_numbers = #tpu.dot_dimension_numbers<[1], [0], [0], [1], [0, 0, 1, 1], [], []>} : vector<2x32xf32>, vector<32x32xf32>, vector<2x32xf32> -> vector<2x32xf32>
    %89 = arith.addf %87, %88 : vector<2x32xf32>
    %90 = math.tanh %89 : vector<2x32xf32>
    %c0_29 = arith.constant 0 : index
    %c0_30 = arith.constant 0 : index
    %91 = vector.load %arg7[%c0_29, %c0_30] : memref<32x8xf32, #tpu.memory_space<vmem>>, vector<32x8xf32>
    %cst_31 = arith.constant dense<0.000000e+00> : vector<2x8xf32>
    %92 = tpu.matmul %90, %91, %cst_31 {dimension_numbers = #tpu.dot_dimension_numbers<[1], [0], [0], [1], [0, 0, 1, 1], [], []>} : vector<2x32xf32>, vector<32x8xf32>, vector<2x8xf32> -> vector<2x8xf32>
    %c0_32 = arith.constant 0 : index
    %c0_33 = arith.constant 0 : index
    %93 = vector.load %arg8[%c0_32, %c0_33] : memref<1x8xf32, #tpu.memory_space<vmem>>, vector<1x8xf32>
    %94 = vector.broadcast %93 : vector<1x8xf32> to vector<2x8xf32>
    %95 = arith.addf %92, %94 : vector<2x8xf32>
    %c0_34 = arith.constant 0 : index
    %c0_35 = arith.constant 0 : index
    %96 = vector.load %arg9[%c0_34, %c0_35] : memref<2x8xf32, #tpu.memory_space<vmem>>, vector<2x8xf32>
    tpu.vector_store %arg9[%c0_34, %c0_35], %95 {strides = array<i32>} : memref<2x8xf32, #tpu.memory_space<vmem>>, vector<2x8xf32>,
    return
  }
}

</mosaic_0001>

<bundles_post_ra>
// kernel: tpu_custom_call.1
= control target key start
LH: loop header
LB: loop body
LE: loop exit
PB: predicated region body
PF: predicated region fallthrough
CT: control target
= control target key end

     0   :  { %14 = vsyncpa [#allocation3], 0  ;;  %s2424_s0 = inlined_call_operand.hbm [shape: f32[2,8,32], index: 0, kind: input, shape index: {}]   ;;  %s2425_s1 = inlined_call_operand.vmem [shape: f32[32,32], index: 1, kind: input, shape index: {}]   ;;  %s2426_s2 = inlined_call_operand.hbm [shape: f32[32,32], index: 2, kind: input, shape index: {}]   ;;  %s2427_s3 = inlined_call_operand.vmem [shape: f32[1,32], index: 3, kind: input, shape index: {}]   ;;  %s2428_s4 = inlined_call_operand.hbm [shape: f32[32,32], index: 4, kind: input, shape index: {}]   ;;  %s2429_s5 = inlined_call_operand.hbm [shape: f32[32,32], index: 5, kind: input, shape index: {}]   ;;  %s2430_s6 = inlined_call_operand.vmem [shape: f32[1,32], index: 6, kind: input, shape index: {}]   ;;  %s2431_s7 = inlined_call_operand.vmem [shape: f32[32,8], index: 7, kind: input, shape index: {}]   ;;  %s2432_s8 = inlined_call_operand.vmem [shape: f32[1,8], index: 8, kind: input, shape index: {}]   ;;  %s2433_s9 = inlined_call_operand.hbm [shape: f32[2,8], index: 9, kind: output, shape index: {}]  }
   0x1   :  { %15 = vsyncpa [#allocation6], 0 }
   0x2   :  { %16 = vsyncpa [#allocation9], 0 }
   0x3   :  { %17 = vsyncpa [#allocation4], 0  ;;  %s2098_s30 = smov [#allocation5]   ;;  %s2099_s11 = smov [#allocation2]  }
   0x4   :  { %s37_s10 = sshll.u32 %s2098_s30, 4  ;;  %s23_s12 = sshll.u32 %s2099_s11, 4  ;;  %s38_s10 = int_to_ptr.vmem [resolvable:$true] %s37_s10  ;;  %s2158_s12 = int_to_ptr.vmem [resolvable:$true] %s23_s12 }
   0x5   :  { %s1980_s15 = scalar_lea.hbm %s2426_s2, 512 }
   0x6   :  { %p1981_p0 = scmp.ne.s32.totalorder %s2426_s2, %s1980_s15  ;;  %p1984_p1 = scmp.lt.u32.totalorder %s1980_s15, %s2426_s2 }
   0x8   :  { %p1986_p2 = pnand %p1984_p1, %p1981_p0 }
   0xa   :  { %1989 = shalt.err (!%p1986_p2)
}
   0xb   :  { %s1990_s20 = scalar_lea.vmem %s38_s10, 512  ;;  %p1995_p4 = scmp.lt.s32.totalorder %s38_s10, %s38_s10 }
   0xc   :  { %p1991_p3 = scmp.ne.s32.totalorder %s38_s10, %s1990_s20  ;;  %p1996_p5 = scmp.lt.s32.totalorder %s1990_s20, %s1990_s20 }
   0xe   :  { %p1997_p6 = por %p1996_p5, %p1995_p4 }
  0x10   :  { %p1998_p7 = pnand %p1997_p6, %p1991_p3 }
  0x12   :  { %2001 = shalt.err (!%p1998_p7)
}
  0x13   :  { %s2100_s21 = smov 128   ;;  %s2101_s22 = smov 8  }
  0x14   :  { %43 = dma.hbm_to_vmem [thread:$0]  %s2426_s2, 512, %s38_s10, [#allocation6], %s2100_s21, %s2100_s21, %s2101_s22  }
  0x15   :  { %s2002_s27 = scalar_lea.hbm %s2424_s0, 256 }
  0x16   :  { %p2003_p8 = scmp.ne.s32.totalorder %s2424_s0, %s2002_s27  ;;  %p2006_p9 = scmp.lt.u32.totalorder %s2002_s27, %s2424_s0 }
  0x18   :  { %p2008_p10 = pnand %p2006_p9, %p2003_p8 }
  0x1a   :  { %2011 = shalt.err (!%p2008_p10)
}
  0x1b   :  { %s2012_s13 = scalar_lea.vmem %s2158_s12, 256  ;;  %p2017_p12 = scmp.lt.s32.totalorder %s2158_s12, %s2158_s12 }
  0x1c   :  { %p2013_p11 = scmp.ne.s32.totalorder %s2158_s12, %s2012_s13  ;;  %p2018_p13 = scmp.lt.s32.totalorder %s2012_s13, %s2012_s13 }
  0x1e   :  { %p2019_p0 = por %p2018_p13, %p2017_p12 }
  0x20   :  { %p2020_p1 = pnand %p2019_p0, %p2013_p11 }
  0x22   :  { %2023 = shalt.err (!%p2020_p1)
}
  0x23   :  { %29 = dma.hbm_to_vmem [thread:$0]  %s2424_s0, 256, %s2158_s12, [#allocation3], %s2100_s21, %s2100_s21, %s2101_s22  }
  0x24   :  { %s2102_s14 = smov [#allocation7]   ;;  %s2103_s16 = smov [#allocation8]  }
  0x25   :  { %s51_s15 = sshll.u32 %s2102_s14, 4  ;;  %s63_s17 = sshll.u32 %s2103_s16, 4  ;;  %s52_s15 = int_to_ptr.vmem [resolvable:$true] %s51_s15  ;;  %s2195_s17 = int_to_ptr.vmem [resolvable:$true] %s63_s17 }
  0x26   :  { %s2024_s20 = scalar_lea.hbm %s2428_s4, 512 }
  0x27   :  { %p2025_p2 = scmp.ne.s32.totalorder %s2428_s4, %s2024_s20  ;;  %p2028_p3 = scmp.lt.u32.totalorder %s2024_s20, %s2428_s4 }
  0x29   :  { %p2030_p4 = pnand %p2028_p3, %p2025_p2 }
  0x2b   :  { %2033 = shalt.err (!%p2030_p4)
}
  0x2c   :  { %s2034_s0 = scalar_lea.vmem %s52_s15, 512  ;;  %p2039_p6 = scmp.lt.s32.totalorder %s52_s15, %s52_s15 }
  0x2d   :  { %p2035_p5 = scmp.ne.s32.totalorder %s52_s15, %s2034_s0  ;;  %p2040_p7 = scmp.lt.s32.totalorder %s2034_s0, %s2034_s0 }
  0x2f   :  { %p2041_p8 = por %p2040_p7, %p2039_p6 }
  0x31   :  { %p2042_p9 = pnand %p2041_p8, %p2035_p5 }
  0x33   :  { %2045 = shalt.err (!%p2042_p9)
}
  0x34   :  { %57 = dma.hbm_to_vmem [thread:$0]  %s2428_s4, 512, %s52_s15, [#allocation6], %s2100_s21, %s2100_s21, %s2101_s22  }
  0x35   :  { %s2046_s30 = scalar_lea.hbm %s2429_s5, 512 }
  0x36   :  { %p2047_p10 = scmp.ne.s32.totalorder %s2429_s5, %s2046_s30  ;;  %p2050_p11 = scmp.lt.u32.totalorder %s2046_s30, %s2429_s5 }
  0x38   :  { %p2052_p12 = pnand %p2050_p11, %p2047_p10 }
  0x3a   :  { %2055 = shalt.err (!%p2052_p12)
}
  0x3b   :  { %s2056_s14 = scalar_lea.vmem %s2195_s17, 512  ;;  %p2061_p0 = scmp.lt.s32.totalorder %s2195_s17, %s2195_s17 }
  0x3c   :  { %p2057_p13 = scmp.ne.s32.totalorder %s2195_s17, %s2056_s14  ;;  %p2062_p1 = scmp.lt.s32.totalorder %s2056_s14, %s2056_s14 }
  0x3e   :  { %p2063_p2 = por %p2062_p1, %p2061_p0 }
  0x40   :  { %p2064_p3 = pnand %p2063_p2, %p2057_p13 }
  0x42   :  { %2067 = shalt.err (!%p2064_p3)
}
  0x43   :  { %69 = dma.hbm_to_vmem [thread:$0]  %s2429_s5, 512, %s2195_s17, [#allocation9], %s2100_s21, %s2100_s21, %s2101_s22  }
  0x44   :  { %2090 = dma.done.wait [#allocation3], 256  }
  0x45   :  { %2091 = vsyncadd [#allocation3], 4294967040 }
  0x46   :  { %2092 = dma.done.wait [#allocation6], 1024  }
  0x47   :  { %2093 = vsyncadd [#allocation6], 4294966272 }
  0x48   :  { %2094 = dma.done.wait [#allocation9], 512  }
  0x49   :  { %2095 = vsyncadd [#allocation9], 4294966784  ;;  %vm93_vm0 = vcmask 1041409   ;;  %vm98_vm1 = vcmask 1043459   ;;  %v135_v0 = vld [vmem:[%s2425_s1] sm:$0xff]  ;;  %v136_v1 = vld [vmem:[%s2425_s1 + $0x8] sm:$0xff] }
  0x4a   :  { %v137_v2 = vld [vmem:[%s2425_s1 + $0x10] sm:$0xff]  ;;  %vm103_vm2 = vcmask 1045509   ;;  %vm108_vm3 = vcmask 1047559   ;;  %vm126_vm4 = vcmask 1041408   ;;  %v1832_v3 = vpack.c.bf16 %v136_v1, %v135_v0  ;;  %v138_v4 = vld [vmem:[%s2425_s1 + $0x18] sm:$0xff]  ;;  %v88_v5 = vld [vmem:[#allocation2] sm:$0xff] }
  0x4b   :  { %v89_v6 = vld [vmem:[#allocation2 + $0x8] sm:$0xff]  ;;  %vm128_vm5 = vcmask 1043456   ;;  %vm130_vm6 = vcmask 1045504   ;;  %vm150_vm7 = vcmask 261120   ;;  %v1836_v7 = vpack.c.bf16 %v138_v4, %v137_v2  ;;  %v139_v36 = vld [vmem:[#allocation5] sm:$0xff]  ;;  %v140_v37 = vld [vmem:[#allocation5 + $0x8] sm:$0xff] }
  0x4c   :  { %v92_v8 = vrot.slane %v89_v6, 7  ;;  %v96_v9 = vrot.slane %v88_v5, 7  ;;  %v97_v10 = vrot.slane %v89_v6, 6  ;;  %1833 = vmatprep.subr.bf16.mxu0 %v1832_v3  ;;  %v101_v11 = vrot.slane %v88_v5, 6  ;;  %v141_v38 = vld [vmem:[#allocation5 + $0x10] sm:$0xff]  ;;  %v142_v41 = vld [vmem:[#allocation5 + $0x18] sm:$0xff] }
  0x4d   :  { %v102_v12 = vrot.slane %v89_v6, 5  ;;  %v106_v13 = vrot.slane %v88_v5, 5  ;;  %v107_v14 = vrot.slane %v89_v6, 4  ;;  %1835 = vmatpush3.bf16.msra.mxu0 %v1832_v3  ;;  %v111_v17 = vrot.slane %v88_v5, 4  ;;  %v1536_v44 = vld [vmem:[%s2427_s3] ss:$0 sm:$0xff] }
  0x4e   :  { %v94_v15 = vsel %vm93_vm0, %v92_v8, %v88_v5  ;;  %v99_v16 = vsel %vm98_vm1, %v97_v10, %v96_v9  ;;  %v112_v18 = vrot.slane %v89_v6, 3  ;;  %1837 = vmatprep.subr.bf16.mxu0 %v1836_v7  ;;  %v115_v22 = vrot.slane %v88_v5, 3  ;;  %s2107_s13 = smov [#allocation10]  }
  0x4f   :  { %v104_v19 = vsel %vm103_vm2, %v102_v12, %v101_v11  ;;  %v109_v20 = vsel %vm108_vm3, %v107_v14, %v106_v13  ;;  %v127_v21 = vsel %vm126_vm4, %v94_v15, %v99_v16  ;;  %v116_v25 = vrot.slane %v89_v6, 2  ;;  %s1525_s2 = sshll.u32 %s2107_s13, 4  ;;  %s1526_s2 = int_to_ptr.vmem [resolvable:$true] %s1525_s2 }
  0x50   :  { %v129_v23 = vsel %vm128_vm5, %v127_v21, %v104_v19  ;;  %v113_v24 = vsel %vm93_vm0, %v112_v18, %v111_v17  ;;  %v119_v26 = vrot.slane %v88_v5, 2  ;;  %v120_v28 = vrot.slane %v89_v6, 1  ;;  %p2073_p5 = scmp.lt.s32.totalorder %s1526_s2, %s1526_s2 }
  0x51   :  { %v131_v27 = vsel %vm130_vm6, %v129_v23, %v109_v20  ;;  %v123_v29 = vrot.slane %v88_v5, 1  ;;  %1839 = vmatpush3.bf16.msra.mxu0 %v1836_v7  ;;  %v117_v30 = vsel %vm98_vm1, %v116_v25, %v115_v22  ;;  %v2104_v39 = vmov 0.0|0.0   ;;  %v787_v25 = vld [vmem:[#allocation7] sm:$0xff] }
  0x52   :  { %1653 = vmatprep.mubr.msk.f32.mxu0 %vm150_vm7, %v131_v27  ;;  %v121_v31 = vsel %vm103_vm2, %v120_v28, %v119_v26  ;;  %v132_v33 = vsel %vm126_vm4, %v113_v24, %v117_v30  ;;  %1840 = vmatprep.subr.bf16.mxu1 %v2104_v39  ;;  %v2261_v40 = vpack.c.bf16 %v140_v37, %v139_v36  ;;  %vm2105_vm8 = vmmov 0   ;;  %v788_v26 = vld [vmem:[#allocation7 + $0x8] sm:$0xff]  ;;  %v789_v27 = vld [vmem:[#allocation7 + $0x10] sm:$0xff]  ;;  %v791_v37 = vld [vmem:[#allocation8] sm:$0xff] }
  0x53   :  { %v124_v32 = vsel %vm108_vm3, %v89_v6, %v123_v29  ;;  %v133_v34 = vsel %vm128_vm5, %v132_v33, %v121_v31  ;;  %v2106_v42 = vmov 0.0   ;;  %1846 = vmatprep.subr.bf16.mxu0 %v2104_v39  ;;  %v2269_v43 = vpack.c.bf16 %v142_v41, %v141_v38  ;;  %v790_v29 = vld [vmem:[#allocation7 + $0x18] sm:$0xff]  ;;  %v792_v38 = vld [vmem:[#allocation8 + $0x8] sm:$0xff] }
  0x54   :  { %v134_v35 = vsel %vm130_vm6, %v133_v34, %v124_v32  ;;  %1664 = vmatprep.mubr.msk.f32.mxu1 %vm2105_vm8, %v2106_v42  ;;  %1842 = vmatpush3.bf16.msra.mxu1 %v2261_v40  ;;  %v1882_v28 = vpack.c.bf16 %v788_v26, %v787_v25  ;;  %v1886_v30 = vpack.c.bf16 %v790_v29, %v789_v27  ;;  %vm1517_vm9 = vcmask 58368  }
  0x55   :  { %1654 = vmatmul.mubr.msk.f32.vlgmr.msra.gmra.mrb[0].mxu0 %vm150_vm7, %v134_v35  ;;  %1843 = vmatprep.subr.bf16.mxu1 %v2104_v39  ;;  %v2336_v41 = vpack.c.bf16 %v792_v38, %v791_v37 }
  0x56   :  { %1675 = vmatprep.mubr.msk.f32.mxu0 %vm2105_vm8, %v2106_v42  ;;  %1848 = vmatpush3.bf16.msra.mxu0 %v2261_v40 }
  0x57   :  { %1849 = vmatprep.subr.bf16.mxu0 %v2104_v39 }
  0x58   :  { %1845 = vmatpush3.bf16.msra.mxu1 %v2269_v43 }
  0x59   :  { %1852 = vmatprep.subr.bf16.mxu1 %v2104_v39 }
  0x5a   :  { %1851 = vmatpush3.bf16.msra.mxu0 %v2269_v43 }
  0x5b   :  { %1858 = vmatprep.subr.bf16.mxu0 %v2104_v39 }
 0x128   :  { %v1655_v45 = vpop.f32.mrb[0].mxu0 }
 0x129   :  { %v2281_v46 = vadd.f32 %v1655_v45, %v1536_v44  ;;  %v223_v47 = vpop.f32.mrb[1].mxu0  ;;  %v1546_v45 = vld [vmem:[%s2430_s6] ss:$0 sm:$0xff] }
 0x12a   :  { %v224_v48 = vadd.f32 %v1536_v44, %v223_v47 }
 0x12c   :  { %1948 = vtanh.f32 %v224_v48 }
 0x136   :  { %v1949_v49 = vpop.eup %1948 }
 0x137   :  { %1665 = vmatmul.mubr.msk.f32.vlgmr.msra.gmra.mrb[0].mxu1 %vm150_vm7, %v1949_v49 }
 0x138   :  { %1854 = vmatpush3.bf16.msra.mxu1 %v2261_v40  ;;  %1686 = vmatprep.mubr.msk.f32.mxu1 %vm2105_vm8, %v2106_v42 }
 0x139   :  { %1855 = vmatprep.subr.bf16.mxu1 %v2104_v39 }
 0x13c   :  { %1857 = vmatpush3.bf16.msra.mxu1 %v2269_v43 }
 0x13d   :  { %1864 = vmatprep.subr.bf16.mxu1 %v2104_v39 }
 0x20a   :  { %v302_v50 = vpop.f32.mrb[0].mxu1 }
 0x20b   :  { %v307_v51 = vrot.slane %v302_v50, 6  ;;  %v1666_v52 = vpop.f32.mrb[1].mxu1 }
 0x20d   :  { %v309_v53 = vadd.f32 %v307_v51, %v224_v48 }
 0x20f   :  { %1950 = vtanh.f32 %v309_v53 }
 0x219   :  { %v1951_v54 = vpop.eup %1950 }
 0x21a   :  { %v312_v55 = vrot.slane %v1951_v54, 2  ;;  %v781_v61 = vsel %vm126_vm4, %v1949_v49, %v1951_v54 }
 0x21c   :  { %1676 = vmatmul.mubr.msk.f32.vlgmr.msra.gmra.mrb[2].mxu0 %vm150_vm7, %v312_v55 }
 0x21d   :  { %1860 = vmatpush3.bf16.msra.mxu0 %v2261_v40  ;;  %1697 = vmatprep.mubr.msk.f32.mxu0 %vm2105_vm8, %v2106_v42 }
 0x21e   :  { %1861 = vmatprep.subr.bf16.mxu0 %v2104_v39 }
 0x221   :  { %1863 = vmatpush3.bf16.msra.mxu0 %v2269_v43 }
 0x222   :  { %1870 = vmatprep.subr.bf16.mxu0 %v2104_v39 }
 0x2ef   :  { %v381_v56 = vpop.f32.mrb[2].mxu0 }
 0x2f0   :  { %v386_v57 = vrot.slane %v381_v56, 4  ;;  %v1677_v58 = vpop.f32.mrb[3].mxu0 }
 0x2f2   :  { %v388_v59 = vadd.f32 %v386_v57, %v224_v48 }
 0x2f4   :  { %1952 = vtanh.f32 %v388_v59 }
 0x2fe   :  { %v1953_v60 = vpop.eup %1952 }
 0x2ff   :  { %v391_v62 = vrot.slane %v1953_v60, 4  ;;  %v782_v63 = vsel %vm128_vm5, %v781_v61, %v1953_v60 }
 0x301   :  { %1687 = vmatmul.mubr.msk.f32.vlgmr.msra.gmra.mrb[2].mxu1 %vm150_vm7, %v391_v62 }
 0x302   :  { %1866 = vmatpush3.bf16.msra.mxu1 %v2261_v40  ;;  %1708 = vmatprep.mubr.msk.f32.mxu1 %vm2105_vm8, %v2106_v42 }
 0x303   :  { %1867 = vmatprep.subr.bf16.mxu1 %v2104_v39 }
 0x306   :  { %1869 = vmatpush3.bf16.msra.mxu1 %v2269_v43 }
 0x307   :  { %1876 = vmatprep.subr.bf16.mxu1 %v2104_v39 }
 0x3d4   :  { %v460_v0 = vpop.f32.mrb[2].mxu1 }
 0x3d5   :  { %v465_v1 = vrot.slane %v460_v0, 2  ;;  %v1688_v2 = vpop.f32.mrb[3].mxu1 }
 0x3d7   :  { %v467_v3 = vadd.f32 %v465_v1, %v224_v48 }
 0x3d9   :  { %1954 = vtanh.f32 %v467_v3 }
 0x3e3   :  { %v1955_v4 = vpop.eup %1954 }
 0x3e4   :  { %v470_v5 = vrot.slane %v1955_v4, 6  ;;  %v783_v6 = vsel %vm130_vm6, %v782_v63, %v1955_v4 }
 0x3e6   :  { %1698 = vmatmul.mubr.msk.f32.vlgmr.msra.gmra.mrb[4].mxu0 %vm150_vm7, %v470_v5 }
 0x3e7   :  { %1872 = vmatpush3.bf16.msra.mxu0 %v2261_v40  ;;  %1719 = vmatprep.mubr.msk.f32.mxu0 %vm2105_vm8, %v2106_v42 }
 0x3e8   :  { %1873 = vmatprep.subr.bf16.mxu0 %v2104_v39 }
 0x3eb   :  { %1875 = vmatpush3.bf16.msra.mxu0 %v2269_v43 }
 0x3ec   :  { %1883 = vmatprep.subr.bf16.mxu0 %v1882_v28 }
 0x4b9   :  { %v539_v7 = vpop.f32.mrb[4].mxu0 }
 0x4ba   :  { %v543_v8 = vadd.f32 %v539_v7, %v2281_v46  ;;  %v1699_v9 = vpop.f32.mrb[5].mxu0 }
 0x4bc   :  { %1956 = vtanh.f32 %v543_v8 }
 0x4c6   :  { %v1957_v10 = vpop.eup %1956 }
 0x4c7   :  { %1709 = vmatmul.mubr.msk.f32.vlgmr.msra.gmra.mrb[4].mxu1 %vm150_vm7, %v1957_v10 }
 0x4c8   :  { %1878 = vmatpush3.bf16.msra.mxu1 %v2261_v40  ;;  %1730 = vmatprep.mubr.msk.f32.mxu1 %vm2105_vm8, %v2106_v42  ;;  %v793_v40 = vld [vmem:[#allocation8 + $0x10] sm:$0xff] }
 0x4c9   :  { %1879 = vmatprep.subr.bf16.mxu1 %v2104_v39 }
 0x4cc   :  { %1881 = vmatpush3.bf16.msra.mxu1 %v2269_v43  ;;  %v794_v43 = vld [vmem:[#allocation8 + $0x18] sm:$0xff] }
 0x4cd   :  { %1890 = vmatprep.subr.bf16.mxu1 %v2104_v39  ;;  %v2339_v44 = vpack.c.bf16 %v794_v43, %v793_v40 }
 0x59a   :  { %v614_v11 = vpop.f32.mrb[4].mxu1 }
 0x59b   :  { %v619_v12 = vrot.slane %v614_v11, 6  ;;  %v1710_v13 = vpop.f32.mrb[5].mxu1 }
 0x59d   :  { %v621_v14 = vadd.f32 %v619_v12, %v2281_v46 }
 0x59f   :  { %1958 = vtanh.f32 %v621_v14 }
 0x5a9   :  { %v1959_v15 = vpop.eup %1958 }
 0x5aa   :  { %v624_v16 = vrot.slane %v1959_v15, 2  ;;  %v784_v22 = vsel %vm126_vm4, %v1957_v10, %v1959_v15 }
 0x5ac   :  { %1720 = vmatmul.mubr.msk.f32.vlgmr.msra.gmra.mrb[6].mxu0 %vm150_vm7, %v624_v16 }
 0x5ad   :  { %1741 = vmatprep.mubr.msk.f32.mxu0 %vm150_vm7, %v783_v6  ;;  %1885 = vmatpush3.bf16.msra.mxu0 %v1882_v28 }
 0x5ae   :  { %1887 = vmatprep.subr.bf16.mxu0 %v1886_v30 }
 0x5b1   :  { %1889 = vmatpush3.bf16.msra.mxu0 %v1886_v30 }
 0x5b2   :  { %1896 = vmatprep.subr.bf16.mxu0 %v2104_v39 }
 0x67f   :  { %v693_v17 = vpop.f32.mrb[6].mxu0 }
 0x680   :  { %v698_v18 = vrot.slane %v693_v17, 4  ;;  %v1721_v19 = vpop.f32.mrb[7].mxu0 }
 0x682   :  { %v700_v20 = vadd.f32 %v698_v18, %v2281_v46 }
 0x684   :  { %1960 = vtanh.f32 %v700_v20 }
 0x68e   :  { %v1961_v21 = vpop.eup %1960 }
 0x68f   :  { %v703_v23 = vrot.slane %v1961_v21, 4  ;;  %v785_v24 = vsel %vm128_vm5, %v784_v22, %v1961_v21  ;;  %v1432_v21 = vld [vmem:[%s2431_s7] sm:$0xff]  ;;  %v1433_v22 = vld [vmem:[%s2431_s7 + $0x8] sm:$0xff] }
 0x691   :  { %1731 = vmatmul.mubr.msk.f32.vlgmr.msra.gmra.mrb[6].mxu1 %vm150_vm7, %v703_v23  ;;  %v1933_v23 = vpack.c.bf16 %v1433_v22, %v1432_v21 }
 0x692   :  { %1752 = vmatprep.mubr.msk.f32.mxu1 %vm2105_vm8, %v2106_v42  ;;  %1892 = vmatpush3.bf16.msra.mxu1 %v2336_v41 }
 0x693   :  { %1893 = vmatprep.subr.bf16.mxu1 %v2104_v39 }
 0x696   :  { %1895 = vmatpush3.bf16.msra.mxu1 %v2339_v44 }
 0x697   :  { %1902 = vmatprep.subr.bf16.mxu1 %v2104_v39 }
 0x764   :  { %v772_v31 = vpop.f32.mrb[6].mxu1 }
 0x765   :  { %v777_v32 = vrot.slane %v772_v31, 2  ;;  %v1732_v33 = vpop.f32.mrb[7].mxu1 }
 0x767   :  { %v779_v34 = vadd.f32 %v777_v32, %v2281_v46 }
 0x769   :  { %1962 = vtanh.f32 %v779_v34 }
 0x773   :  { %v1963_v35 = vpop.eup %1962 }
 0x774   :  { %v786_v36 = vsel %vm130_vm6, %v785_v24, %v1963_v35  ;;  %v1435_v24 = vld [vmem:[%s2431_s7 + $0x18] sm:$0xff] }
 0x775   :  { %1742 = vmatmul.mubr.msk.f32.vlgmr.msra.gmra.mrb[8].mxu0 %vm150_vm7, %v786_v36 }
 0x776   :  { %1763 = vmatprep.mubr.msk.f32.mxu0 %vm2105_vm8, %v2106_v42  ;;  %1898 = vmatpush3.bf16.msra.mxu0 %v2336_v41 }
 0x777   :  { %1899 = vmatprep.subr.bf16.mxu0 %v2104_v39 }
 0x77a   :  { %1901 = vmatpush3.bf16.msra.mxu0 %v2339_v44 }
 0x77b   :  { %1908 = vmatprep.subr.bf16.mxu0 %v2104_v39 }
 0x848   :  { %v1743_v46 = vpop.f32.mrb[8].mxu0 }
 0x849   :  { %v2351_v47 = vadd.f32 %v1743_v46, %v1546_v45  ;;  %v874_v48 = vpop.f32.mrb[9].mxu0 }
 0x84a   :  { %v875_v49 = vadd.f32 %v1546_v45, %v874_v48 }
 0x84c   :  { %1964 = vtanh.f32 %v875_v49 }
 0x856   :  { %v1965_v50 = vpop.eup %1964 }
 0x857   :  { %1753 = vmatmul.mubr.msk.f32.vlgmr.msra.gmra.mrb[8].mxu1 %vm150_vm7, %v1965_v50 }
 0x858   :  { %1904 = vmatpush3.bf16.msra.mxu1 %v2336_v41  ;;  %1774 = vmatprep.mubr.msk.f32.mxu1 %vm2105_vm8, %v2106_v42 }
 0x859   :  { %1905 = vmatprep.subr.bf16.mxu1 %v2104_v39 }
 0x85c   :  { %1907 = vmatpush3.bf16.msra.mxu1 %v2339_v44 }
 0x85d   :  { %1914 = vmatprep.subr.bf16.mxu1 %v2104_v39 }
 0x92a   :  { %v953_v51 = vpop.f32.mrb[8].mxu1 }
 0x92b   :  { %v958_v52 = vrot.slane %v953_v51, 6  ;;  %v1754_v53 = vpop.f32.mrb[9].mxu1 }
 0x92d   :  { %v960_v54 = vadd.f32 %v958_v52, %v875_v49 }
 0x92f   :  { %1966 = vtanh.f32 %v960_v54 }
 0x939   :  { %v1967_v55 = vpop.eup %1966 }
 0x93a   :  { %v963_v56 = vrot.slane %v1967_v55, 2 }
 0x93c   :  { %1764 = vmatmul.mubr.msk.f32.vlgmr.msra.gmra.mrb[10].mxu0 %vm150_vm7, %v963_v56 }
 0x93d   :  { %1910 = vmatpush3.bf16.msra.mxu0 %v2336_v41  ;;  %1785 = vmatprep.mubr.msk.f32.mxu0 %vm2105_vm8, %v2106_v42 }
 0x93e   :  { %1911 = vmatprep.subr.bf16.mxu0 %v2104_v39 }
 0x941   :  { %1913 = vmatpush3.bf16.msra.mxu0 %v2339_v44 }
 0x942   :  { %1920 = vmatprep.subr.bf16.mxu0 %v2104_v39 }
 0xa0f   :  { %v1032_v57 = vpop.f32.mrb[10].mxu0 }
 0xa10   :  { %v1037_v58 = vrot.slane %v1032_v57, 4  ;;  %v1765_v59 = vpop.f32.mrb[11].mxu0 }
 0xa12   :  { %v1039_v60 = vadd.f32 %v1037_v58, %v875_v49 }
 0xa14   :  { %1968 = vtanh.f32 %v1039_v60 }
 0xa1e   :  { %v1969_v61 = vpop.eup %1968 }
 0xa1f   :  { %v1042_v62 = vrot.slane %v1969_v61, 4 }
 0xa21   :  { %1775 = vmatmul.mubr.msk.f32.vlgmr.msra.gmra.mrb[10].mxu1 %vm150_vm7, %v1042_v62 }
 0xa22   :  { %1916 = vmatpush3.bf16.msra.mxu1 %v2336_v41  ;;  %1796 = vmatprep.mubr.msk.f32.mxu1 %vm2105_vm8, %v2106_v42 }
 0xa23   :  { %1917 = vmatprep.subr.bf16.mxu1 %v2104_v39 }
 0xa26   :  { %1919 = vmatpush3.bf16.msra.mxu1 %v2339_v44 }
 0xa27   :  { %1926 = vmatprep.subr.bf16.mxu1 %v2104_v39 }
 0xaf4   :  { %v1111_v63 = vpop.f32.mrb[10].mxu1 }
 0xaf5   :  { %v1116_v0 = vrot.slane %v1111_v63, 2  ;;  %v1776_v1 = vpop.f32.mrb[11].mxu1 }
 0xaf7   :  { %v1118_v2 = vadd.f32 %v1116_v0, %v875_v49 }
 0xaf9   :  { %1970 = vtanh.f32 %v1118_v2 }
 0xb03   :  { %v1971_v3 = vpop.eup %1970 }
 0xb04   :  { %v1121_v4 = vrot.slane %v1971_v3, 6 }
 0xb06   :  { %1786 = vmatmul.mubr.msk.f32.vlgmr.msra.gmra.mrb[12].mxu0 %vm150_vm7, %v1121_v4 }
 0xb07   :  { %1922 = vmatpush3.bf16.msra.mxu0 %v2336_v41  ;;  %1807 = vmatprep.mubr.msk.f32.mxu0 %vm2105_vm8, %v2106_v42 }
 0xb08   :  { %1923 = vmatprep.subr.bf16.mxu0 %v2104_v39 }
 0xb0b   :  { %1925 = vmatpush3.bf16.msra.mxu0 %v2339_v44 }
 0xb0c   :  { %1932 = vmatprep.subr.bf16.mxu0 %v2104_v39 }
 0xbd9   :  { %v1190_v5 = vpop.f32.mrb[12].mxu0 }
 0xbda   :  { %v1194_v6 = vadd.f32 %v1190_v5, %v2351_v47  ;;  %v1787_v7 = vpop.f32.mrb[13].mxu0 }
 0xbdc   :  { %1972 = vtanh.f32 %v1194_v6 }
 0xbe6   :  { %v1973_v8 = vpop.eup %1972 }
 0xbe7   :  { %1797 = vmatmul.mubr.msk.f32.vlgmr.msra.gmra.mrb[12].mxu1 %vm150_vm7, %v1973_v8 }
 0xbe8   :  { %1928 = vmatpush3.bf16.msra.mxu1 %v2336_v41  ;;  %1818 = vmatprep.mubr.msk.f32.mxu1 %vm2105_vm8, %v2106_v42 }
 0xbe9   :  { %1929 = vmatprep.subr.bf16.mxu1 %v2104_v39 }
 0xbec   :  { %1931 = vmatpush3.bf16.msra.mxu1 %v2339_v44 }
 0xcba   :  { %v1265_v9 = vpop.f32.mrb[12].mxu1 }
 0xcbb   :  { %v1270_v10 = vrot.slane %v1265_v9, 6  ;;  %v1798_v11 = vpop.f32.mrb[13].mxu1 }
 0xcbd   :  { %v1272_v12 = vadd.f32 %v1270_v10, %v2351_v47 }
 0xcbf   :  { %1974 = vtanh.f32 %v1272_v12 }
 0xcc9   :  { %v1975_v13 = vpop.eup %1974 }
 0xcca   :  { %v1275_v14 = vrot.slane %v1975_v13, 2 }
 0xccc   :  { %1808 = vmatmul.mubr.msk.f32.vlgmr.msra.gmra.mrb[14].mxu0 %vm150_vm7, %v1275_v14 }
 0xccd   :  { %1829 = vmatprep.mubr.msk.f32.mxu0 %vm2105_vm8, %v2106_v42  ;;  %1934 = vmatpush3.bf16.msra.mxu0 %v1933_v23  ;;  %v1434_v42 = vld [vmem:[%s2431_s7 + $0x10] sm:$0xff]  ;;  %s2068_s7 = scalar_lea.vmem %s1526_s2, 32 }
 0xcce   :  { %1935 = vmatprep.subr.bf16.mxu0 %v2104_v39  ;;  %v1936_v25 = vpack.c.bf16 %v1435_v24, %v1434_v42  ;;  %v1556_v39 = vld [vmem:[%s2432_s8] ss:$0 sm:$0xff]  ;;  %p2069_p4 = scmp.ne.s32.totalorder %s1526_s2, %s2068_s7  ;;  %p2074_p6 = scmp.lt.s32.totalorder %s2068_s7, %s2068_s7 }
 0xcd0   :  { %p2075_p7 = por %p2074_p6, %p2073_p5 }
 0xcd1   :  { %1937 = vmatpush3.bf16.msra.mxu0 %v1936_v25 }
 0xcd2   :  { %p2076_p8 = pnand %p2075_p7, %p2069_p4 }
 0xd9f   :  { %v1344_v15 = vpop.f32.mrb[14].mxu0 }
 0xda0   :  { %v1349_v16 = vrot.slane %v1344_v15, 4  ;;  %v1809_v17 = vpop.f32.mrb[15].mxu0 }
 0xda2   :  { %v1351_v18 = vadd.f32 %v1349_v16, %v2351_v47 }
 0xda4   :  { %1976 = vtanh.f32 %v1351_v18 }
 0xdae   :  { %v1977_v19 = vpop.eup %1976 }
 0xdaf   :  { %v1354_v20 = vrot.slane %v1977_v19, 4 }
 0xdb1   :  { %1819 = vmatmul.mubr.msk.f32.vlgmr.msra.gmra.mrb[14].mxu1 %vm150_vm7, %v1354_v20 }
 0xe84   :  { %v1423_v26 = vpop.f32.mrb[14].mxu1 }
 0xe85   :  { %v1428_v27 = vrot.slane %v1423_v26, 2  ;;  %v1820_v28 = vpop.f32.mrb[15].mxu1 }
 0xe87   :  { %v1430_v29 = vadd.f32 %v1428_v27, %v2351_v47 }
 0xe89   :  { %1978 = vtanh.f32 %v1430_v29 }
 0xe93   :  { %v1979_v30 = vpop.eup %1978 }
 0xe94   :  { %v1444_v31 = vrot.slane %v1979_v30, 6 }
 0xe96   :  { %1830 = vmatmul.mubr.msk.f32.vlgmr.msra.gmra.mrb[16].mxu0 %vm150_vm7, %v1444_v31 }
 0xf69   :  { %v1513_v32 = vpop.f32.mrb[16].mxu0 }
 0xf6a   :  { %v1514_v33 = vadd.f32 %v1556_v39, %v1513_v32  ;;  %v1831_v34 = vpop.f32.mrb[17].mxu0 }
 0xf6c   :  { %1518 = vst.msk [vmem:[#allocation10] sm:$0x3] %vm1517_vm9, %v1514_v33 }
 0xf6d   :  { %2079 = shalt.err (!%p2076_p8)
}
 0xf6e   :  { %s2080_s4 = scalar_lea.hbm %s2433_s9, 32 }
 0xf6f   :  { %p2081_p9 = scmp.ne.s32.totalorder %s2433_s9, %s2080_s4  ;;  %p2084_p10 = scmp.lt.u32.totalorder %s2080_s4, %s2433_s9 }
 0xf71   :  { %p2086_p11 = pnand %p2084_p10, %p2081_p9 }
 0xf73   :  { %2089 = shalt.err (!%p2086_p11)
}
 0xf74   :  { %1528 = dma.vmem_to_hbm [thread:$0]  %s1526_s2, 32, %s2433_s9, [#allocation4]  }
 0xf75   :  { %2096 = dma.done.wait [#allocation4], 32  }
 0xf76   :  { %2097 = vsyncadd [#allocation4], 4294967264 }
 0xf77   :  { %1532 = vsyncpa [#allocation3], 1 }
 0xf78   :  { %1533 = vsyncpa [#allocation6], 1 }
 0xf79   :  { %1534 = vsyncpa [#allocation9], 1 }
 0xf7a   :  { %1535 = vsyncpa [#allocation4], 1 }

</bundles_post_ra>
